<compile_context>
chip_gen: v6e
topology: v6e:2x2x1
jax: 0.10.0
libtpu: 0.0.40
codegen_flags: <defaults>
</compile_context>

<pallas_src>
import jax
import jax.numpy as jnp
from jax.experimental import pallas as pl
from jax.experimental.pallas import tpu as pltpu

IN_FEATURES = 2
HIDDEN = 32
OUT_FEATURES = 2


def learner_mlp_kernel(xT_ref, w1t_ref, b1t_ref, w2_ref, b2t_ref, oT_ref):
    """Transposed (batch-on-lane) fused MLP tile.

    xT_ref : [IN, TB]        w1t_ref: [HIDDEN, IN]   b1t_ref: [HIDDEN, 1]
    w2_ref : [HIDDEN, OUT]   b2t_ref: [OUT, 1]       oT_ref : [OUT, TB]
    """
    x0 = xT_ref[0:1, :]                          # [1, TB]
    x1 = xT_ref[1:2, :]                          # [1, TB]

    # Layer 1 (K=2): two broadcast FMAs on the VPU; bias seeds the accumulator.
    h = (b1t_ref[...]
         + w1t_ref[:, 0:1] * x0
         + w1t_ref[:, 1:2] * x1)                 # [HIDDEN, TB]
    h = jnp.maximum(h, 0.0)                      # ReLU (VPU)

    # Layer 2 (OUT=2): VPU multiply + cross-sublane reduce, bias folded in.
    y0 = jnp.sum(h * w2_ref[:, 0:1], axis=0, keepdims=True) + b2t_ref[0:1, :]
    y1 = jnp.sum(h * w2_ref[:, 1:2], axis=0, keepdims=True) + b2t_ref[1:2, :]

    oT_ref[0:1, :] = y0.astype(oT_ref.dtype)     # lane-dense stores
    oT_ref[1:2, :] = y1.astype(oT_ref.dtype)


def learner_forward(x, w1, b1, w2, b2, *, tb=512):
    """x: [B, IN_FEATURES] f32 -> [B, OUT_FEATURES] f32."""
    B = x.shape[0]

    # Batch tile on the lane axis: multiple of 128; don't over-pad tiny batches.
    bp_min = pl.cdiv(B, 128) * 128
    tb = min(tb, bp_min)
    Bp = pl.cdiv(B, tb) * tb

    # Wrapper-side layout plumbing: transpose to batch-on-lane and pad.
    xT = jnp.pad(x.T, ((0, 0), (0, Bp - B)))          # [IN, Bp]
    w1t = w1.T                                        # [HIDDEN, IN]
    b1t = b1.reshape(HIDDEN, 1)                       # [HIDDEN, 1]
    b2t = b2.reshape(OUT_FEATURES, 1)                 # [OUT, 1]

    grid = (Bp // tb,)
    yT = pl.pallas_call(
        learner_mlp_kernel,
        out_shape=jax.ShapeDtypeStruct((OUT_FEATURES, Bp), x.dtype),
        grid=grid,
        in_specs=[
            pl.BlockSpec((IN_FEATURES, tb), lambda i: (0, i)),       # x^T tile
            pl.BlockSpec((HIDDEN, IN_FEATURES), lambda i: (0, 0)),   # W1^T (resident)
            pl.BlockSpec((HIDDEN, 1), lambda i: (0, 0)),             # b1   (resident)
            pl.BlockSpec((HIDDEN, OUT_FEATURES), lambda i: (0, 0)),  # W2   (resident)
            pl.BlockSpec((OUT_FEATURES, 1), lambda i: (0, 0)),       # b2   (resident)
        ],
        out_specs=pl.BlockSpec((OUT_FEATURES, tb), lambda i: (0, i)),
        compiler_params=pltpu.CompilerParams(
            dimension_semantics=("parallel",)),  # shards across v7x's 2 TCs
    )(xT, w1t, b1t, w2, b2t)

    return yT[:, :B].T                                # [B, OUT]


def init_params(key):
    k1, k2, k3, k4 = jax.random.split(key, 4)
    # Deterministic, PyTorch-Linear-like uniform init (fan_in scaling).
    lim1 = 1.0 / jnp.sqrt(IN_FEATURES)
    lim2 = 1.0 / jnp.sqrt(HIDDEN)
    w1 = jax.random.uniform(k1, (IN_FEATURES, HIDDEN), jnp.float32, -lim1, lim1)
    b1 = jax.random.uniform(k2, (1, HIDDEN), jnp.float32, -lim1, lim1)
    w2 = jax.random.uniform(k3, (HIDDEN, OUT_FEATURES), jnp.float32, -lim2, lim2)
    b2 = jax.random.uniform(k4, (1, OUT_FEATURES), jnp.float32, -lim2, lim2)
    return w1, b1, w2, b2


if __name__ == "__main__":
    key = jax.random.PRNGKey(0)
    kx, kp = jax.random.split(key)

    batch = 8
    x = jax.random.normal(kx, (batch, IN_FEATURES), jnp.float32)
    w1, b1, w2, b2 = init_params(kp)

    out = learner_forward(x, w1, b1, w2, b2)
    out = jax.block_until_ready(out)

    # Sanity check against plain-JAX reference.
    ref = jnp.maximum(x @ w1 + b1, 0.0) @ w2 + b2
    assert out.shape == (batch, OUT_FEATURES)
    assert jnp.allclose(out, ref, atol=1e-5, rtol=1e-5)

    print("KERNEL_OK")
</pallas_src>

<mosaic_0001>
module attributes {stable_mosaic.version = 11 : i64} {
  func.func @learner_mlp_kernel(%arg0: i32, %arg1: memref<2x128xf32, #tpu.memory_space<vmem>>, %arg2: memref<32x2xf32, #tpu.memory_space<vmem>>, %arg3: memref<32x1xf32, #tpu.memory_space<vmem>>, %arg4: memref<32x2xf32, #tpu.memory_space<vmem>>, %arg5: memref<2x1xf32, #tpu.memory_space<vmem>>, %arg6: memref<2x128xf32, #tpu.memory_space<vmem>>) attributes {dimension_semantics = [#tpu.dimension_semantics<parallel>], iteration_bounds = array<i64: 1>, scalar_prefetch = 0 : i64, scratch_operands = 0 : i64, tpu.core_type = #tpu.core_type<tc>, window_params = [{transform_indices = @transform_0, window_bounds = array<i64: 2, 128>}, {pipeline_mode = #tpu.pipeline_mode<synchronous>, transform_indices = @transform_1, window_bounds = array<i64: 32, 2>}, {pipeline_mode = #tpu.pipeline_mode<synchronous>, transform_indices = @transform_2, window_bounds = array<i64: 32, 1>}, {pipeline_mode = #tpu.pipeline_mode<synchronous>, transform_indices = @transform_3, window_bounds = array<i64: 32, 2>}, {pipeline_mode = #tpu.pipeline_mode<synchronous>, transform_indices = @transform_4, window_bounds = array<i64: 2, 1>}, {transform_indices = @transform_5, window_bounds = array<i64: 2, 128>}]} {
    %c0 = arith.constant 0 : index
    %c0_0 = arith.constant 0 : index
    %0 = vector.load %arg1[%c0, %c0_0] : memref<2x128xf32, #tpu.memory_space<vmem>>, vector<1x128xf32>
    %c1 = arith.constant 1 : index
    %c0_1 = arith.constant 0 : index
    %1 = vector.load %arg1[%c1, %c0_1] : memref<2x128xf32, #tpu.memory_space<vmem>>, vector<1x128xf32>
    %c0_2 = arith.constant 0 : index
    %c0_3 = arith.constant 0 : index
    %2 = vector.load %arg3[%c0_2, %c0_3] : memref<32x1xf32, #tpu.memory_space<vmem>>, vector<32x1xf32>
    %c0_4 = arith.constant 0 : index
    %c0_5 = arith.constant 0 : index
    %3 = vector.load %arg2[%c0_4, %c0_5] : memref<32x2xf32, #tpu.memory_space<vmem>>, vector<32x1xf32>
    %4 = vector.broadcast %3 : vector<32x1xf32> to vector<32x128xf32>
    %5 = vector.broadcast %0 : vector<1x128xf32> to vector<32x128xf32>
    %6 = arith.mulf %4, %5 : vector<32x128xf32>
    %7 = vector.broadcast %2 : vector<32x1xf32> to vector<32x128xf32>
    %8 = arith.addf %7, %6 : vector<32x128xf32>
    %c0_6 = arith.constant 0 : index
    %c1_7 = arith.constant 1 : index
    %9 = vector.load %arg2[%c0_6, %c1_7] : memref<32x2xf32, #tpu.memory_space<vmem>>, vector<32x1xf32>
    %10 = vector.broadcast %9 : vector<32x1xf32> to vector<32x128xf32>
    %11 = vector.broadcast %1 : vector<1x128xf32> to vector<32x128xf32>
    %12 = arith.mulf %10, %11 : vector<32x128xf32>
    %13 = arith.addf %8, %12 : vector<32x128xf32>
    %cst = arith.constant 0.000000e+00 : f32
    %14 = vector.broadcast %cst : f32 to vector<32x128xf32>
    %15 = arith.maximumf %13, %14 : vector<32x128xf32>
    %c0_8 = arith.constant 0 : index
    %c0_9 = arith.constant 0 : index
    %16 = vector.load %arg4[%c0_8, %c0_9] : memref<32x2xf32, #tpu.memory_space<vmem>>, vector<32x1xf32>
    %17 = vector.broadcast %16 : vector<32x1xf32> to vector<32x128xf32>
    %18 = arith.mulf %15, %17 : vector<32x128xf32>
    %cst_10 = arith.constant dense<0.000000e+00> : vector<128xf32>
    %19 = vector.multi_reduction <add>, %18, %cst_10 [0] : vector<32x128xf32> to vector<128xf32>
    %20 = vector.shape_cast %19 : vector<128xf32> to vector<1x128xf32>
    %c0_11 = arith.constant 0 : index
    %c0_12 = arith.constant 0 : index
    %21 = vector.load %arg5[%c0_11, %c0_12] : memref<2x1xf32, #tpu.memory_space<vmem>>, vector<1x1xf32>
    %22 = vector.broadcast %21 : vector<1x1xf32> to vector<1x128xf32>
    %23 = arith.addf %20, %22 : vector<1x128xf32>
    %c0_13 = arith.constant 0 : index
    %c1_14 = arith.constant 1 : index
    %24 = vector.load %arg4[%c0_13, %c1_14] : memref<32x2xf32, #tpu.memory_space<vmem>>, vector<32x1xf32>
    %25 = vector.broadcast %24 : vector<32x1xf32> to vector<32x128xf32>
    %26 = arith.mulf %15, %25 : vector<32x128xf32>
    %cst_15 = arith.constant dense<0.000000e+00> : vector<128xf32>
    %27 = vector.multi_reduction <add>, %26, %cst_15 [0] : vector<32x128xf32> to vector<128xf32>
    %28 = vector.shape_cast %27 : vector<128xf32> to vector<1x128xf32>
    %c1_16 = arith.constant 1 : index
    %c0_17 = arith.constant 0 : index
    %29 = vector.load %arg5[%c1_16, %c0_17] : memref<2x1xf32, #tpu.memory_space<vmem>>, vector<1x1xf32>
    %30 = vector.broadcast %29 : vector<1x1xf32> to vector<1x128xf32>
    %31 = arith.addf %28, %30 : vector<1x128xf32>
    %c0_18 = arith.constant 0 : index
    %c0_19 = arith.constant 0 : index
    %32 = vector.load %arg6[%c0_18, %c0_19] : memref<2x128xf32, #tpu.memory_space<vmem>>, vector<1x128xf32>
    tpu.vector_store %arg6[%c0_18, %c0_19], %23 {strides = array<i32>} : memref<2x128xf32, #tpu.memory_space<vmem>>, vector<1x128xf32>,
    %c1_20 = arith.constant 1 : index
    %c0_21 = arith.constant 0 : index
    %33 = vector.load %arg6[%c1_20, %c0_21] : memref<2x128xf32, #tpu.memory_space<vmem>>, vector<1x128xf32>
    tpu.vector_store %arg6[%c1_20, %c0_21], %31 {strides = array<i32>} : memref<2x128xf32, #tpu.memory_space<vmem>>, vector<1x128xf32>,
    return
  }
  func.func @transform_0(%arg0: i32) -> (i32, i32) {
    %c0_i32 = arith.constant 0 : i32
    %c0_i32_0 = arith.constant 0 : i32
    return %c0_i32, %arg0 : i32, i32
  }
  func.func @transform_1(%arg0: i32) -> (i32, i32) {
    %c0_i32 = arith.constant 0 : i32
    %c0_i32_0 = arith.constant 0 : i32
    %c0_i32_1 = arith.constant 0 : i32
    return %c0_i32, %c0_i32_0 : i32, i32
  }
  func.func @transform_2(%arg0: i32) -> (i32, i32) {
    %c0_i32 = arith.constant 0 : i32
    %c0_i32_0 = arith.constant 0 : i32
    %c0_i32_1 = arith.constant 0 : i32
    return %c0_i32, %c0_i32_0 : i32, i32
  }
  func.func @transform_3(%arg0: i32) -> (i32, i32) {
    %c0_i32 = arith.constant 0 : i32
    %c0_i32_0 = arith.constant 0 : i32
    %c0_i32_1 = arith.constant 0 : i32
    return %c0_i32, %c0_i32_0 : i32, i32
  }
  func.func @transform_4(%arg0: i32) -> (i32, i32) {
    %c0_i32 = arith.constant 0 : i32
    %c0_i32_0 = arith.constant 0 : i32
    %c0_i32_1 = arith.constant 0 : i32
    return %c0_i32, %c0_i32_0 : i32, i32
  }
  func.func @transform_5(%arg0: i32) -> (i32, i32) {
    %c0_i32 = arith.constant 0 : i32
    %c0_i32_0 = arith.constant 0 : i32
    return %c0_i32, %arg0 : i32, i32
  }
}

</mosaic_0001>

<bundles_post_ra>
// kernel: tpu_custom_call.1
= control target key start
LH: loop header
LB: loop body
LE: loop exit
PB: predicated region body
PF: predicated region fallthrough
CT: control target
= control target key end

     0   :  { %v245_v2 = vmov 1   ;;  %v246_v3 = vmov 0   ;;  %s329_s0 = inlined_call_operand.vmem [shape: f32[2,128], index: 0, kind: input, shape index: {}]   ;;  %s330_s1 = inlined_call_operand.vmem [shape: f32[32,2], index: 1, kind: input, shape index: {}]   ;;  %s331_s2 = inlined_call_operand.vmem [shape: f32[32,1], index: 2, kind: input, shape index: {}]   ;;  %s332_s3 = inlined_call_operand.vmem [shape: f32[32,2], index: 3, kind: input, shape index: {}]   ;;  %s333_s4 = inlined_call_operand.vmem [shape: f32[2,1], index: 4, kind: input, shape index: {}]   ;;  %s334_s5 = inlined_call_operand.hbm [shape: f32[2,128], index: 5, kind: output, shape index: {}]  }
   0x1   :  { %v29_v0 = vld [vmem:[%s330_s1 + $0x10] sm:$0xff]  ;;  %v28_v1 = vld [vmem:[%s330_s1 + $0x8] sm:$0xff]  ;;  %218 = vset.pattern.permute.xlu0 %v245_v2  ;;  %216 = vset.pattern.permute.xlu1 %v246_v3  ;;  %v23_v4 = vld [vmem:[%s331_s2] sm:$0xff] }
   0x2   :  { %43 = vperm.xlu1 %216, %v29_v0   ;;  %88 = vperm.xlu0 %218, %v28_v1  }
   0x3   :  { %10 = vsyncpa [#allocation3], 0  ;;  %v30_v5 = vld [vmem:[%s330_s1 + $0x18] sm:$0xff]  ;;  %v27_v6 = vld [vmem:[%s330_s1] sm:$0xff] }
   0x4   :  { %v25_v7 = vld [vmem:[%s331_s2 + $0x10] sm:$0xff]  ;;  %v24_v8 = vld [vmem:[%s331_s2 + $0x8] sm:$0xff]  ;;  %v26_v9 = vld [vmem:[%s331_s2 + $0x18] sm:$0xff] }
   0x5   :  { %v116_v10 = vld [vmem:[%s332_s3 + $0x8] sm:$0xff]  ;;  %v115_v11 = vld [vmem:[%s332_s3] sm:$0xff]  ;;  %v117_v12 = vld [vmem:[%s332_s3 + $0x10] sm:$0xff] }
   0x6   :  { %92 = vperm.xlu0 %218, %v29_v0   ;;  %61 = vperm.xlu1 %216, %v23_v4   ;;  %v118_v13 = vld [vmem:[%s332_s3 + $0x18] sm:$0xff]  ;;  %v152_v14 = vld [vmem:[%s333_s4] sm:$0x1]  ;;  %v188_v15 = vld [vmem:[%s333_s4 + $0x1] sm:$0x1] }
   0x7   :  { %v211_v22 = vld [vmem:[%s329_s0] ss:$0 sm:$0xff]  ;;  %v212_v26 = vld [vmem:[%s329_s0 + $0x1] ss:$0 sm:$0xff]  ;;  %s247_s0 = smov [#allocation2]  }
   0x8   :  { %s203_s4 = sshll.u32 %s247_s0, 4  ;;  %s204_s4 = int_to_ptr.vmem [resolvable:$true] %s203_s4 }
   0x9   :  { %s223_s22 = scalar_lea.vmem %s204_s4, 32  ;;  %p228_p1 = scmp.lt.s32.totalorder %s204_s4, %s204_s4 }
   0xa   :  { %96 = vperm.xlu0 %218, %v30_v5   ;;  %217 = vset.pattern.permute.xlu1 %v245_v2  ;;  %p224_p0 = scmp.ne.s32.totalorder %s204_s4, %s223_s22  ;;  %p229_p2 = scmp.lt.s32.totalorder %s223_s22, %s223_s22 }
   0xb   :  { %84 = vperm.xlu1 %217, %v27_v6  }
   0xc   :  { %p230_p3 = por %p229_p2, %p228_p1 }
   0xe   :  { %220 = vset.pattern.permute.xlu0 %v246_v3  ;;  %p231_p4 = pnand %p230_p3, %p224_p0 }
   0xf   :  { %33 = vperm.xlu0 %220, %v27_v6   ;;  %219 = vset.pattern.permute.xlu1 %v246_v3 }
  0x10   :  { %48 = vperm.xlu1 %219, %v30_v5  }
  0x13   :  { %38 = vperm.xlu0 %220, %v28_v1  }
  0x14   :  { %71 = vperm.xlu1 %219, %v25_v7  }
  0x17   :  { %66 = vperm.xlu0 %220, %v24_v8  }
  0x18   :  { %76 = vperm.xlu1 %219, %v26_v9  }
  0x1b   :  { %126 = vperm.xlu0 %220, %v116_v10  }
  0x1c   :  { %121 = vperm.xlu1 %219, %v115_v11  }
  0x1f   :  { %131 = vperm.xlu0 %220, %v117_v12  }
  0x20   :  { %221 = vset.pattern.permute.xlu1 %v245_v2 }
  0x21   :  { %160 = vperm.xlu1 %221, %v115_v11  }
  0x23   :  { %136 = vperm.xlu0 %220, %v118_v13  }
  0x25   :  { %164 = vperm.xlu1 %221, %v116_v10  }
  0x27   :  { %155 = vperm.xlu0 %220, %v152_v14  }
  0x29   :  { %168 = vperm.xlu1 %221, %v117_v12  }
  0x2d   :  { %172 = vperm.xlu1 %221, %v118_v13  }
  0x31   :  { %222 = vset.pattern.permute.xlu1 %v246_v3 }
  0x32   :  { %191 = vperm.xlu1 %222, %v188_v15  }
  0x7d   :  { %v44_v16 = vpop.permute.xlu1 %43  ;;  %v89_v17 = vpop.permute.xlu0 %88 }
  0x7e   :  { %v57_v29 = vmul.f32 %v211_v22, %v44_v16  ;;  %v104_v36 = vmul.f32 %v212_v26, %v89_v17 }
  0x81   :  { %v62_v18 = vpop.permute.xlu1 %61  ;;  %v93_v19 = vpop.permute.xlu0 %92 }
  0x82   :  { %v105_v37 = vmul.f32 %v212_v26, %v93_v19 }
  0x85   :  { %v97_v20 = vpop.permute.xlu0 %96 }
  0x86   :  { %v85_v21 = vpop.permute.xlu1 %84  ;;  %v106_v46 = vmul.f32 %v212_v26, %v97_v20 }
  0x87   :  { %v103_v32 = vmul.f32 %v212_v26, %v85_v21 }
  0x8a   :  { %v34_v23 = vpop.permute.xlu0 %33 }
  0x8b   :  { %v55_v24 = vmul.f32 %v211_v22, %v34_v23  ;;  %v49_v25 = vpop.permute.xlu1 %48 }
  0x8c   :  { %v58_v38 = vmul.f32 %v211_v22, %v49_v25 }
  0x8d   :  { %v79_v27 = vadd.f32 %v62_v18, %v55_v24 }
  0x8e   :  { %v39_v28 = vpop.permute.xlu0 %38 }
  0x8f   :  { %v56_v30 = vmul.f32 %v211_v22, %v39_v28  ;;  %v72_v31 = vpop.permute.xlu1 %71  ;;  %v107_v35 = vadd.f32 %v103_v32, %v79_v27 }
  0x90   :  { %v81_v33 = vadd.f32 %v72_v31, %v57_v29 }
  0x91   :  { %v111_v45 = vmax.f32 %v107_v35, 0.0 }
  0x92   :  { %v67_v34 = vpop.permute.xlu0 %66  ;;  %v109_v41 = vadd.f32 %v105_v37, %v81_v33 }
  0x93   :  { %v80_v39 = vadd.f32 %v67_v34, %v56_v30  ;;  %v77_v40 = vpop.permute.xlu1 %76 }
  0x94   :  { %v82_v43 = vadd.f32 %v77_v40, %v58_v38  ;;  %v113_v52 = vmax.f32 %v109_v41, 0.0 }
  0x95   :  { %v108_v42 = vadd.f32 %v104_v36, %v80_v39 }
  0x96   :  { %v127_v44 = vpop.permute.xlu0 %126  ;;  %v110_v50 = vadd.f32 %v106_v46, %v82_v43 }
  0x97   :  { %v112_v47 = vmax.f32 %v108_v42, 0.0  ;;  %v122_v48 = vpop.permute.xlu1 %121 }
  0x98   :  { %v139_v49 = vmul.f32 %v122_v48, %v111_v45  ;;  %v114_v57 = vmax.f32 %v110_v50, 0.0 }
  0x99   :  { %v140_v51 = vmul.f32 %v127_v44, %v112_v47 }
  0x9a   :  { %v132_v53 = vpop.permute.xlu0 %131 }
  0x9b   :  { %v143_v54 = vadd.f32 %v140_v51, %v139_v49  ;;  %v141_v55 = vmul.f32 %v132_v53, %v113_v52 }
  0x9c   :  { %v161_v56 = vpop.permute.xlu1 %160 }
  0x9d   :  { %v144_v59 = vadd.f32 %v143_v54, %v141_v55  ;;  %v175_v2 = vmul.f32 %v161_v56, %v111_v45 }
  0x9e   :  { %v137_v58 = vpop.permute.xlu0 %136 }
  0x9f   :  { %v142_v60 = vmul.f32 %v137_v58, %v114_v57 }
  0xa0   :  { %v165_v61 = vpop.permute.xlu1 %164 }
  0xa1   :  { %v145_v62 = vadd.f32 %v144_v59, %v142_v60  ;;  %v176_v0 = vmul.f32 %v165_v61, %v112_v47 }
  0xa2   :  { %v156_v15 = vpop.permute.xlu0 %155 }
  0xa3   :  { %v146_v63 = vrot.slane %v145_v62, 4  ;;  %v179_v5 = vadd.f32 %v176_v0, %v175_v2 }
  0xa4   :  { %v169_v1 = vpop.permute.xlu1 %168 }
  0xa5   :  { %v147_v3 = vadd.f32 %v146_v63, %v145_v62  ;;  %v177_v4 = vmul.f32 %v169_v1, %v113_v52 }
  0xa7   :  { %v148_v6 = vrot.slane %v147_v3, 2  ;;  %v180_v9 = vadd.f32 %v179_v5, %v177_v4 }
  0xa8   :  { %v173_v7 = vpop.permute.xlu1 %172 }
  0xa9   :  { %v149_v8 = vadd.f32 %v148_v6, %v147_v3  ;;  %v178_v10 = vmul.f32 %v173_v7, %v114_v57 }
  0xab   :  { %v150_v11 = vrot.slane %v149_v8, 1  ;;  %v181_v12 = vadd.f32 %v180_v9, %v178_v10 }
  0xad   :  { %v151_v13 = vadd.f32 %v150_v11, %v149_v8  ;;  %v182_v14 = vrot.slane %v181_v12, 4  ;;  %v192_v21 = vpop.permute.xlu1 %191 }
  0xaf   :  { %v158_v16 = vadd.f32 %v156_v15, %v151_v13  ;;  %v183_v17 = vadd.f32 %v182_v14, %v181_v12 }
  0xb1   :  { %195 = vst [vmem:[#allocation2] sm:$0x1] %v158_v16  ;;  %v184_v18 = vrot.slane %v183_v17, 2 }
  0xb3   :  { %v185_v19 = vadd.f32 %v184_v18, %v183_v17 }
  0xb5   :  { %v186_v20 = vrot.slane %v185_v19, 1 }
  0xb7   :  { %v187_v22 = vadd.f32 %v186_v20, %v185_v19 }
  0xb9   :  { %v194_v23 = vadd.f32 %v192_v21, %v187_v22 }
  0xbb   :  { %196 = vst [vmem:[#allocation2 + $0x1] sm:$0x1] %v194_v23 }
  0xbc   :  { %234 = shalt.err (!%p231_p4)
}
  0xbd   :  { %206 = dma.vmem_to_hbm [thread:$0]  %s204_s4, 32, %s334_s5, [#allocation3]  }
  0xbe   :  { %243 = dma.done.wait [#allocation3], 32  }
  0xbf   :  { %244 = vsyncadd [#allocation3], 4294967264 }
  0xc0   :  { %210 = vsyncpa [#allocation3], 1 }

</bundles_post_ra>
